<compile_context>
chip_gen: v7x
topology: tpu7x:2x2x1
jax: 0.10.0
libtpu: 0.0.40
codegen_flags: <defaults>
</compile_context>

<pallas_src>
import math
from typing import NamedTuple

import jax
import jax.numpy as jnp
from jax.experimental import pallas as pl
from jax.experimental.pallas import tpu as pltpu

_LANE = 128
_SUBLANE = 8


def _round_up(n, m):
    return ((n + m - 1) // m) * m


def _row_align(dtype):
    # rows per packed sublane group: 8 for 32-bit, 16 for 16-bit, 32 for 8-bit
    return _SUBLANE * max(1, 4 // jnp.dtype(dtype).itemsize)


def _vmem_capacity_bytes():
    try:
        return int(pltpu.get_tpu_info().vmem_capacity_bytes)
    except Exception:
        return 64 * 1024 * 1024  # conservative fallback (v7x has 64 MiB)


class GaussianParams(NamedTuple):
    wt: jax.Array        # (pack*in_features, out_cols) kernel-ready weight
    b2: jax.Array        # (1, out_cols) kernel-ready bias (f32, scale folded)
    in_features: int
    out_features: int
    pack: int            # logical rows packed per physical kernel row
    out_cols: int        # lane-dense output width (multiple of 128)


def prepare_gaussian_params(weight, bias, *, scale=30.0,
                            compute_dtype=jnp.float32):
    """One-time parameter prep (do NOT call per forward pass).

    Folds `scale` into weight/bias, transposes the PyTorch [out, in] weight to
    [in, out] for the MXU, and re-packs so the kernel's output last dim is a
    multiple of 128 lanes (full-width unmasked stores).
    """
    out_features, in_features = weight.shape
    if bias is None:
        bias = jnp.zeros((out_features,), jnp.float32)
    wt = (scale * weight.T).astype(compute_dtype)        # (in, out)
    b = (scale * bias).astype(jnp.float32)               # bias stays f32
    w_item = jnp.dtype(compute_dtype).itemsize

    if out_features % _LANE == 0:
        pack, out_cols = 1, out_features
    elif _LANE % out_features == 0:
        # Pack p rows per physical row via a block-diagonal weight; the packed
        # [R, p*out] output is a free row-major reshape back to [p*R, out].
        pack = _LANE // out_features
        # If cheap, enlarge pack so in_cols = pack*in_features is also a
        # multiple of 128 (lane-dense x loads, fully-used MXU K dim).
        in_align = _LANE // math.gcd(in_features, _LANE)
        bigger = math.lcm(pack, in_align)
        if (bigger <= 64 and
                bigger * bigger * in_features * out_features * w_item
                <= 4 * 1024 * 1024):
            pack = bigger
        out_cols = pack * out_features
        wt = jnp.kron(jnp.eye(pack, dtype=wt.dtype), wt)  # (pack*in, pack*out)
        b = jnp.tile(b, pack)
    else:
        # Fallback: zero-pad output columns up to a 128 multiple.
        pack = 1
        out_cols = _round_up(out_features, _LANE)
        wt = jnp.pad(wt, ((0, 0), (0, out_cols - out_features)))
        b = jnp.pad(b, (0, out_cols - out_features))

    return GaussianParams(wt=wt, b2=b.reshape(1, out_cols),
                          in_features=in_features, out_features=out_features,
                          pack=pack, out_cols=out_cols)


def _gaussian_layer_kernel(x_ref, wt_ref, b_ref, o_ref):
    # scale already folded into wt/b:  z = scale * (x @ W.T + b)
    w = wt_ref[...]
    x = x_ref[...]
    if x.dtype != w.dtype:
        x = x.astype(w.dtype)            # in-kernel cast (no extra HBM pass)
    z = jnp.dot(x, w, preferred_element_type=jnp.float32)
    z = z + b_ref[...]                   # f32 bias broadcast over rows
    o_ref[...] = jnp.exp(-(z * z)).astype(o_ref.dtype)


def _vmem_bytes(tm, tn, in_cols, x_item, w_item, o_item, w_bufs):
    return (w_bufs * in_cols * tn * w_item     # weight tile
            + w_bufs * tn * 4                  # bias tile (f32)
            + 2 * tm * in_cols * x_item        # x tiles (double-buffered)
            + 2 * tm * tn * o_item)            # out tiles (double-buffered)


def _pick_tm(rows, tn, in_cols, x_item, w_item, o_item, w_bufs, tm_align,
             budget):
    # Largest row tile (capped at 1024) giving >= 4 grid steps when possible
    # (>= 2 per v7x TensorCore -> both cores get compute/DMA overlap), inside
    # a generation-aware VMEM budget.
    tm = min(1024, _round_up(max(pl.cdiv(rows, 4), tm_align), tm_align))
    if tm > rows:
        tm = rows
    while (tm > tm_align and
           _vmem_bytes(tm, tn, in_cols, x_item, w_item, o_item, w_bufs)
           > budget):
        tm = max(tm_align, _round_up(tm // 2, tm_align))
        if tm > rows:
            tm = rows
    return tm


def _sanitize_tm(tm, rows):
    tm = int(tm)
    if tm >= rows:
        return rows                                   # full-dim block is legal
    tm = max(_SUBLANE, (tm // _SUBLANE) * _SUBLANE)   # (8,128) rule
    return min(tm, rows)


def gaussian_layer(x, params: GaussianParams, *, out_dtype=None, tm=None,
                   tn=None, interpret=False):
    """Pallas GaussianLayer forward.  x: [N, in_features] -> [N, out_features]."""
    N, in_features = x.shape
    assert in_features == params.in_features
    p = params.pack
    in_cols = p * in_features
    out_cols = params.out_cols
    out_dtype = jnp.dtype(out_dtype) if out_dtype is not None else x.dtype

    # Pack p logical rows into one physical row (free row-major reshape); only
    # pads when N is not a multiple of the (small) pack factor.
    n_pack = _round_up(N, p)
    if n_pack != N:
        x = jnp.pad(x, ((0, n_pack - N), (0, 0)))
    rows = n_pack // p
    xp = x.reshape(rows, in_cols)

    x_item = xp.dtype.itemsize
    w_item = params.wt.dtype.itemsize
    o_item = out_dtype.itemsize

    vmem_cap = _vmem_capacity_bytes()
    budget = vmem_cap // 2              # leave room for compiler scratch etc.

    # Output-column tiling so the resident weight tile stays bounded
    # (v7x has only 64 MiB of VMEM; large layers cannot be fully resident).
    if tn is None:
        w_budget = (4 if vmem_cap <= 64 * 1024 * 1024 else 8) * 1024 * 1024
        m = out_cols // _LANE
        tn = out_cols
        for d in range(m, 0, -1):
            if m % d == 0:
                tn = d * _LANE
                if in_cols * tn * w_item <= w_budget:
                    break
    assert out_cols % tn == 0 and tn % _LANE == 0
    nj = out_cols // tn
    w_bufs = 1 if nj == 1 else 2        # grid-invariant weight -> single buffer

    tm_align = max(_row_align(xp.dtype), _row_align(out_dtype))
    if tm is None:
        tm = _pick_tm(rows, tn, in_cols, x_item, w_item, o_item, w_bufs,
                      tm_align, budget)
    tm = _sanitize_tm(tm, rows)
    ni = pl.cdiv(rows, tm)              # partial last block; no row padding

    vmem_est = _vmem_bytes(tm, tn, in_cols, x_item, w_item, o_item, w_bufs)
    vmem_limit = max(8 * 1024 * 1024, 2 * vmem_est)
    vmem_limit = min(vmem_limit, vmem_cap * 3 // 4)
    vmem_limit = max(vmem_limit, min(vmem_cap, vmem_est + (4 << 20)))

    x_spec = pl.BlockSpec((tm, in_cols), lambda j, i: (i, 0))
    o_spec = pl.BlockSpec((tm, tn), lambda j, i: (i, j))
    if nj == 1:
        # Weight & bias are grid-invariant -> single-buffer them so they do
        # not consume 2x VMEM (frees room for a large tm).
        w_spec = pl.BlockSpec((in_cols, tn), lambda j, i: (0, j),
                              pipeline_mode=pl.Buffered(1))
        b_spec = pl.BlockSpec((1, tn), lambda j, i: (0, j),
                              pipeline_mode=pl.Buffered(1))
    else:
        w_spec = pl.BlockSpec((in_cols, tn), lambda j, i: (0, j))
        b_spec = pl.BlockSpec((1, tn), lambda j, i: (0, j))

    cost = pl.CostEstimate(
        flops=int(2 * rows * in_cols * out_cols),
        transcendentals=int(rows * out_cols),
        bytes_accessed=int(nj * rows * in_cols * x_item
                           + in_cols * out_cols * w_item
                           + out_cols * 4
                           + rows * out_cols * o_item),
    )

    out = pl.pallas_call(
        _gaussian_layer_kernel,
        out_shape=jax.ShapeDtypeStruct((rows, out_cols), out_dtype),
        grid_spec=pltpu.PrefetchScalarGridSpec(
            num_scalar_prefetch=0,
            grid=(nj, ni),              # weight tile outer, row tiles inner
            in_specs=[x_spec, w_spec, b_spec],
            out_specs=o_spec,
        ),
        compiler_params=pltpu.CompilerParams(
            dimension_semantics=("parallel", "parallel"),
            vmem_limit_bytes=int(vmem_limit),
        ),
        cost_estimate=cost,
        interpret=interpret,
    )(xp, params.wt, params.b2)

    out = out.reshape(rows * p, out_cols // p)     # free reshape when packed
    return out[:N, :params.out_features]


if __name__ == "__main__":
    # Small shapes consistent with an INR MLP layer.
    N = 128
    in_features = 32
    out_features = 64
    scale = 30.0
    weight_init = 0.1

    key = jax.random.PRNGKey(0)
    kx, kw = jax.random.split(key, 2)

    x = jax.random.normal(kx, (N, in_features), dtype=jnp.float32)
    # Deterministic synthetic init mirroring Initializer.gaussian_init
    # (uniform in [-weight_init, weight_init]); bias_init=None -> zeros.
    weight = jax.random.uniform(
        kw, (out_features, in_features), minval=-weight_init,
        maxval=weight_init, dtype=jnp.float32)
    bias = jnp.zeros((out_features,), dtype=jnp.float32)

    # Pure-JAX reference.
    ref = jnp.exp(-(scale * (x @ weight.T + bias)) ** 2)

    # f32 path (tight tolerance).
    params_f32 = prepare_gaussian_params(weight, bias, scale=scale)
    out = jax.block_until_ready(gaussian_layer(x, params_f32))
    assert out.shape == (N, out_features)
    assert jnp.allclose(out, ref, atol=2e-5, rtol=1e-5)

    # bf16 OUTPUT path (accumulate + exp in f32, cast only at the store).
    out_b16o = jax.block_until_ready(
        gaussian_layer(x, params_f32, out_dtype=jnp.bfloat16))
    assert out_b16o.dtype == jnp.bfloat16
    assert float(jnp.max(jnp.abs(out_b16o.astype(jnp.float32) - ref))) < 2e-2

    # bf16 WEIGHT path (x stays f32 in HBM, cast in-kernel; f32 accumulate).
    params_b16w = prepare_gaussian_params(weight, bias, scale=scale,
                                          compute_dtype=jnp.bfloat16)
    out_b16w = jax.block_until_ready(gaussian_layer(x, params_b16w))
    err = jnp.abs(out_b16w - ref)
    assert float(jnp.max(err)) < 1e-1 and float(jnp.mean(err)) < 1e-2

    # Ragged-N path (rows need not be a multiple of the tile size).
    x_odd = x[:71]
    out_odd = jax.block_until_ready(gaussian_layer(x_odd, params_f32))
    assert out_odd.shape == (71, out_features)
    assert jnp.allclose(out_odd, ref[:71], atol=2e-5, rtol=1e-5)

    # Forced out-column tiling (exercises the nj>1 grid used for large layers
    # whose weight would not fit v7x VMEM).
    out_tn = jax.block_until_ready(gaussian_layer(x, params_f32, tn=128))
    assert jnp.allclose(out_tn, ref, atol=2e-5, rtol=1e-5)

    # TODO(synk): nn.Dropout for dropout_prc > 0 is not implemented (module
    # default dropout_prc=0.0 -> Identity, which matches this forward pass).
    print("KERNEL_OK")
</pallas_src>

<mosaic_0001>
module attributes {stable_mosaic.version = 11 : i64} {
  func.func @_gaussian_layer_kernel(%arg0: i32, %arg1: i32, %arg2: memref<8x128xf32, #tpu.memory_space<vmem>>, %arg3: memref<128x256xf32, #tpu.memory_space<vmem>>, %arg4: memref<1x256xf32, #tpu.memory_space<vmem>>, %arg5: memref<8x256xf32, #tpu.memory_space<vmem>>) attributes {dimension_semantics = [#tpu.dimension_semantics<parallel>, #tpu.dimension_semantics<parallel>], iteration_bounds = array<i64: 1, 4>, scalar_prefetch = 0 : i64, scratch_operands = 0 : i64, tpu.core_type = #tpu.core_type<tc>, window_params = [{transform_indices = @transform_0, window_bounds = array<i64: 8, 128>}, {pipeline_mode = #tpu.pipeline_mode<synchronous>, transform_indices = @transform_1, window_bounds = array<i64: 128, 256>}, {pipeline_mode = #tpu.pipeline_mode<synchronous>, transform_indices = @transform_2, window_bounds = array<i64: 1, 256>}, {transform_indices = @transform_3, window_bounds = array<i64: 8, 256>}]} {
    %c0 = arith.constant 0 : index
    %c0_0 = arith.constant 0 : index
    %0 = vector.load %arg3[%c0, %c0_0] : memref<128x256xf32, #tpu.memory_space<vmem>>, vector<128x256xf32>
    %c0_1 = arith.constant 0 : index
    %c0_2 = arith.constant 0 : index
    %1 = vector.load %arg2[%c0_1, %c0_2] : memref<8x128xf32, #tpu.memory_space<vmem>>, vector<8x128xf32>
    %cst = arith.constant dense<0.000000e+00> : vector<8x256xf32>
    %2 = tpu.matmul %1, %0, %cst {dimension_numbers = #tpu.dot_dimension_numbers<[1], [0], [0], [1], [0, 0, 1, 1], [], []>} : vector<8x128xf32>, vector<128x256xf32>, vector<8x256xf32> -> vector<8x256xf32>
    %c0_3 = arith.constant 0 : index
    %c0_4 = arith.constant 0 : index
    %3 = vector.load %arg4[%c0_3, %c0_4] : memref<1x256xf32, #tpu.memory_space<vmem>>, vector<1x256xf32>
    %4 = vector.broadcast %3 : vector<1x256xf32> to vector<8x256xf32>
    %5 = arith.addf %2, %4 : vector<8x256xf32>
    %6 = arith.mulf %5, %5 : vector<8x256xf32>
    %cst_5 = arith.constant 0.000000e+00 : f32
    %7 = vector.broadcast %cst_5 : f32 to vector<8x256xf32>
    %8 = arith.subf %7, %6 : vector<8x256xf32>
    %9 = math.exp %8 : vector<8x256xf32>
    %c0_6 = arith.constant 0 : index
    %c0_7 = arith.constant 0 : index
    %10 = vector.load %arg5[%c0_6, %c0_7] : memref<8x256xf32, #tpu.memory_space<vmem>>, vector<8x256xf32>
    tpu.vector_store %arg5[%c0_6, %c0_7], %9 {strides = array<i32>} : memref<8x256xf32, #tpu.memory_space<vmem>>, vector<8x256xf32>,
    return
  }
  func.func @transform_0(%arg0: i32, %arg1: i32) -> (i32, i32) {
    %c0_i32 = arith.constant 0 : i32
    %c0_i32_0 = arith.constant 0 : i32
    return %arg1, %c0_i32 : i32, i32
  }
  func.func @transform_1(%arg0: i32, %arg1: i32) -> (i32, i32) {
    %c0_i32 = arith.constant 0 : i32
    %c0_i32_0 = arith.constant 0 : i32
    return %c0_i32, %arg0 : i32, i32
  }
  func.func @transform_2(%arg0: i32, %arg1: i32) -> (i32, i32) {
    %c0_i32 = arith.constant 0 : i32
    %c0_i32_0 = arith.constant 0 : i32
    return %c0_i32, %arg0 : i32, i32
  }
  func.func @transform_3(%arg0: i32, %arg1: i32) -> (i32, i32) {
    %c0_i32 = arith.constant 0 : i32
    return %arg1, %arg0 : i32, i32
  }
}

</mosaic_0001>

<bundles_post_ra>
// kernel: tpu_custom_call.1
= control target key start
LH: loop header
LB: loop body
LE: loop exit
PB: predicated region body
PF: predicated region fallthrough
CT: control target
= control target key end

     0   :  { %8 = vsyncpa [#allocation3], 0  ;;  %s1013_s0 = inlined_call_operand.hbm [shape: f32[32,128], index: 0, kind: input, shape index: {}]   ;;  %s1014_s1 = inlined_call_operand.hbm [shape: f32[128,256], index: 1, kind: input, shape index: {}]   ;;  %s1015_s2 = inlined_call_operand.vmem [shape: f32[1,256], index: 2, kind: input, shape index: {}]   ;;  %s1016_s3 = inlined_call_operand.hbm [shape: f32[32,256], index: 3, kind: output, shape index: {}]  }
   0x1   :  { %10 = vsyncpa [#allocation3 + $0x1], 0 }
   0x2   :  { %11 = vsyncpa [#allocation6], 0 }
   0x3   :  { %12 = vsyncpa [#allocation4], 0 }
   0x4   :  { %14 = vsyncpa [#allocation4 + $0x1], 0  ;;  %s794_s12 = smov 0   ;;  %s796_s13 = smov 0  }
   0x5   :  { %s798_s14 = smov 0   ;;  %s800_s15 = smov 0  }
   0x6   :  { %s802_s16 = smov 0   ;;  %s804_s17 = smov 0  }
   0x7 LB: > { %s492_s18 = sadd.s32 4294967295, %s766_s17   ;;  %s493_s19 = sadd.s32 4294967294, %s766_s17   ;;  %s766_s17 = sphi %s804_s17, %s20_s17   ;;  %s762_s16 = sphi %s802_s16, %s1039_s16   ;;  %s758_s15 = sphi %s800_s15, %s1038_s15   ;;  %s754_s14 = sphi %s798_s14, %s1037_s14   ;;  %s750_s13 = sphi %s796_s13, %s1036_s13   ;;  %s746_s12 = sphi %s794_s12, %s1035_s12  }
   0x8   : > { %p52_p0 = scmp.ne.s32.totalorder %s750_s13, %s746_s12  ;;  %p828_p1 = scmp.eq.s32.totalorder %s492_s18, 0 }
   0x9   : > { %p832_p2 = scmp.eq.s32.totalorder %s492_s18, 3  ;;  %p136_p3 = scmp.eq.s32.totalorder %s493_s19, 3 }
   0xa   : > { %s1021_s20 = scalar_select %p828_p1, 1, 0 }
   0xb   : > { %s1022_s21 = scalar_select %p832_p2, 1, 0 }
   0xc   : > { %p838_p4 = por %p828_p1, %p52_p0  ;;  %p494_p5 = scmp.ge.s32.totalorder %s766_s17, 1 }
   0xd   : > { %p843_p6 = por %p136_p3, %p52_p0  ;;  %p143_p7 = scmp.lt.s32.totalorder %s766_s17, 5 }
   0xe   : > { %s1023_s22 = scalar_select %p838_p4, 1, 0 }
   0xf   : > { %s1024_s23 = scalar_select %p843_p6, 1, 0 }
  0x10   : > { %p848_p8 = pnand %p494_p5, %p143_p7  ;;  %s768_s25 = smov [#allocation5]  }
  0x11   : > { %s158_s26 = sshll.u32 %s768_s25, 4  ;;  %s29_s28 = sadd.s32 1, %s762_s16  ;;  %s159_s26 = int_to_ptr.vmem [resolvable:$true] %s158_s26 }
  0x12   : > { %s1025_s24 = scalar_select %p848_p8, 1, 0 }
  0x13   : > { %p550_p9 = pneg %p848_p8  ;;  %s622_s4 = scalar_lea.hbm %s1014_s1, 4096 }
  0x14   : > { %p623_p11 = scmp.ne.s32.totalorder %s1014_s1, %s622_s4  ;;  %p629_p3 = scmp.lt.u32.totalorder %s622_s4, %s1014_s1 }
  0x15   : > { %p856_p10 = pnand %p550_p9, %p828_p1 }
  0x17   : > { %p624_p12 = pneg %p856_p10 }
  0x19   : > { %p625_p13 = pnand %p624_p12, %p623_p11 }
  0x1b   : > { %p626_p0 = pneg %p625_p13 }
  0x1d   : > { %p631_p5 = pnand %p629_p3, %p626_p0 }
  0x1f   : > { %634 = shalt.err (!%p631_p5)
}
  0x20   : > { %s635_s9 = scalar_lea.vmem %s159_s26, 4096  ;;  %p643_p1 = scmp.lt.s32.totalorder %s159_s26, %s159_s26 }
  0x21   : > { %p636_p7 = scmp.ne.s32.totalorder %s159_s26, %s635_s9  ;;  %p644_p4 = scmp.lt.s32.totalorder %s635_s9, %s635_s9 }
  0x23   : > { %p638_p9 = pnand %p636_p7, %p624_p12  ;;  %p645_p8 = por %p644_p4, %p643_p1 }
  0x25   : > { %p639_p6 = pneg %p638_p9 }
  0x27   : > { %p646_p2 = pnand %p645_p8, %p639_p6 }
  0x29   : > { %649 = shalt.err (!%p646_p2)
}
  0x2a   : > { %s769_s10 = smov 256   ;;  %s770_s11 = smov 16  }
  0x2b   : > { %553 = dma.hbm_to_vmem [thread:$0]  (!%p856_p10), %s1014_s1, 4096, %s159_s26, [#allocation6], %s769_s10, %s769_s10, %s770_s11  }
  0x2c   : > { %p30_p1 = scmp.ge.s32.totalorder %s29_s28, 4  ;;  %s39_s25 = sadd.s32 1, %s754_s14 }
  0x2d   : > { %p46_p2 = scmp.ne.s32.totalorder %s754_s14, %s750_s13  ;;  %p47_p4 = scmp.eq.s32.totalorder %s766_s17, 0 }
  0x2e   : > { %s1041_s28 = smov (%p30_p1, %s29_s28), 0  ;;  %p1028_p8 = scmp.ne.s32.totalorder %s1022_s21, 0 }
  0x2f   : > { %p883_p6 = por %p47_p4, %p46_p2  ;;  %s36_s27 = ssub.s32 %s762_s16, %s1041_s28 }
  0x30   : > { %p889_p11 = por %p1028_p8, %p46_p2  ;;  %p563_p12 = scmp.lt.s32.totalorder %s766_s17, 4 }
  0x31   : > { %p37_p10 = scmp.eq.s32.totalorder %s36_s27, 0  ;;  %s180_s26 = sand.u32 1, %s754_s14  }
  0x32   : > { %s498_s4 = sshll.u32 %s180_s26, 3  ;;  %s499_s6 = sshll.u32 %s762_s16, 7 }
  0x33   : > { %s898_s5 = scalar_select %p37_p10, %s754_s14, %s39_s25  }
  0x34   : > { %s904_s9 = scalar_lea.hbm %s1013_s0, %s499_s6  ;;  %s184_s21 = scalar_lea.vmem [#allocation2], %s498_s4 }
  0x35   : > { %s191_s10 = sshll.u32 %s184_s21, 4  ;;  %p910_p13 = pnand %p563_p12, %p883_p6  ;;  %s906_s10 = int_to_ptr.vmem [resolvable:$true] %s191_s10 }
  0x36   : > { %s181_s18 = scalar_lea.sflag [#allocation3], %s180_s26  ;;  %s650_s19 = scalar_lea.hbm %s904_s9, 128 }
  0x37   : > { %p651_p0 = scmp.ne.s32.totalorder %s904_s9, %s650_s19  ;;  %p652_p3 = pneg %p910_p13 }
  0x38   : > { %s655_s4 = scalar_lea.hbm %s1013_s0, 512  ;;  %p656_p9 = scmp.lt.u32.totalorder %s904_s9, %s1013_s0 }
  0x39   : > { %p653_p5 = pnand %p652_p3, %p651_p0  ;;  %p657_p1 = scmp.lt.u32.totalorder %s655_s4, %s650_s19 }
  0x3a   : > { %p659_p4 = scmp.lt.u32.totalorder %s650_s19, %s904_s9 }
  0x3b   : > { %p654_p7 = pneg %p653_p5  ;;  %p658_p2 = por %p657_p1, %p656_p9 }
  0x3d   : > { %p660_p6 = por %p659_p4, %p658_p2 }
  0x3f   : > { %p661_p8 = pnand %p660_p6, %p654_p7 }
  0x41   : > { %664 = shalt.err (!%p661_p8)
}
  0x42   : > { %s665_s26 = scalar_lea.vmem %s906_s10, 128  ;;  %s771_s7 = smov [#allocation2]  }
  0x43   : > { %p666_p12 = scmp.ne.s32.totalorder %s906_s10, %s665_s26  ;;  %s670_s8 = sshll.u32 %s771_s7, 4  ;;  %s671_s8 = int_to_ptr.vmem [resolvable:$false] %s670_s8 }
  0x44   : > { %s672_s21 = scalar_lea.vmem %s671_s8, 256  ;;  %p673_p5 = scmp.lt.s32.totalorder %s906_s10, %s671_s8 }
  0x45   : > { %p668_p10 = pnand %p666_p12, %p652_p3  ;;  %p674_p9 = scmp.lt.s32.totalorder %s672_s21, %s665_s26 }
  0x47   : > { %p669_p0 = pneg %p668_p10  ;;  %p675_p1 = por %p674_p9, %p673_p5 }
  0x49   : > { %p676_p2 = pnand %p675_p1, %p669_p0 }
  0x4b   : > { %679 = shalt.err (!%p676_p2)
}
  0x4c   : > { %557 = dma.hbm_to_vmem [thread:$0]  (!%p910_p13), %s904_s9, 128, %s906_s10, %s181_s18  }
  0x4d   : > { %p1031_p7 = scmp.ne.s32.totalorder %s1025_s24, 0 }
  0x4e   : > { %s942_s19 = sand.u32 (!%p1031_p7), 1, %s750_s13   ;;  %p1032_p3 = scmp.ne.s32.totalorder (!%p1031_p7), %s1023_s22, 0 }
  0x4f   : > { %200 = sbr.rel (%p1031_p7) target bundleno = 371 (0x173), region = 32  ;;  %s501_s25 = sshll.u32 (!%p1031_p7), %s942_s19, 3 }
  0x50   : > { %s203_s27 = scalar_lea.sflag (!%p1031_p7), [#allocation3], %s942_s19  ;;  %s946_s4 = scalar_lea.vmem (!%p1031_p7), [#allocation2], %s501_s25 }
  0x56   : > { %733 = dma.done.wait (%p1032_p3), %s203_s27, 128  }
  0x57   : > { %735 = vsyncadd (%p1032_p3), %s203_s27, 4294967168  ;;  %p1033_p13 = scmp.ne.s32.totalorder %s1021_s20, 0 }
  0x59   : > { %737 = dma.done.wait (%p1033_p13), [#allocation6], 4096  }
  0x5a   : > { %739 = vsyncadd (%p1033_p13), [#allocation6], 4294963200  ;;  %v772_v0 = vmov 0.0   ;;  %v245_v1 = vld [vmem:[#allocation5 + $0x8] sm:$0xff]  ;;  %v247_v2 = vld [vmem:[#allocation5 + $0x18] sm:$0xff]  ;;  %v279_v50 = vlaneseq  ;;  %s503_s24 = sshll.u32 %s942_s19, 4 }
  0x5b   : > { %353 = vmatprep.mubr.f32.mxu0 %v772_v0  ;;  %v244_v3 = vld [vmem:[#allocation5] sm:$0xff]  ;;  %v510_v4 = vpack.c.bf16 %v247_v2, %v245_v1  ;;  %v246_v5 = vld [vmem:[#allocation5 + $0x10] sm:$0xff]  ;;  %v249_v6 = vld [vmem:[#allocation5 + $0x28] sm:$0xff]  ;;  %s509_s9 = sshll.u32 %s758_s15, 8  ;;  %s236_s10 = scalar_lea.vmem [#allocation7], %s503_s24 }
  0x5c   : > { %v251_v7 = vld [vmem:[#allocation5 + $0x38] sm:$0xff]  ;;  %v512_v8 = vpack.c.bf16 %v246_v5, %v244_v3  ;;  %v248_v10 = vld [vmem:[#allocation5 + $0x20] sm:$0xff]  ;;  %v250_v11 = vld [vmem:[#allocation5 + $0x30] sm:$0xff]  ;;  %v280_v51 = vshrl.u32 %v279_v50, 7  ;;  %s387_s11 = sshll.u32 %s236_s10, 4  ;;  %s965_s6 = scalar_lea.hbm %s1016_s3, %s509_s9  ;;  %s967_s11 = int_to_ptr.vmem [resolvable:$true] %s387_s11 }
  0x5d   : > { %v514_v9 = vpack.c.bf16 %v251_v7, %v249_v6  ;;  %v253_v12 = vld [vmem:[#allocation5 + $0x48] sm:$0xff]  ;;  %511 = vmatprep.subr.bf16.mxu0 %v510_v4  ;;  %v255_v13 = vld [vmem:[#allocation5 + $0x58] sm:$0xff]  ;;  %v516_v14 = vpack.c.bf16 %v250_v11, %v248_v10  ;;  %v252_v16 = vld [vmem:[#allocation5 + $0x40] sm:$0xff]  ;;  %s371_s26 = scalar_lea.sflag [#allocation4], %s942_s19  ;;  %s680_s7 = scalar_lea.vmem %s967_s11, 256 }
  0x5e   : > { %513 = vmatpush1.bf16.msra.mxu0 %v512_v8  ;;  %v518_v15 = vpack.c.bf16 %v255_v13, %v253_v12  ;;  %v254_v17 = vld [vmem:[#allocation5 + $0x50] sm:$0xff]  ;;  %v257_v18 = vld [vmem:[#allocation5 + $0x68] sm:$0xff]  ;;  %v259_v19 = vld [vmem:[#allocation5 + $0x78] sm:$0xff]  ;;  %v281_v52 = vsub.s32 0, %v280_v51  ;;  %v285_v54 = vsub.s32 1, %v280_v51  ;;  %p681_p4 = scmp.ne.s32.totalorder %s967_s11, %s680_s7  ;;  %s773_s15 = smov [#allocation7]  }
  0x5f   : > { %515 = vmatprep.subr.bf16.mxu0 %v514_v9  ;;  %v520_v20 = vpack.c.bf16 %v254_v17, %v252_v16  ;;  %v522_v21 = vpack.c.bf16 %v259_v19, %v257_v18  ;;  %v256_v22 = vld [vmem:[#allocation5 + $0x60] sm:$0xff]  ;;  %v258_v23 = vld [vmem:[#allocation5 + $0x70] sm:$0xff]  ;;  %v261_v24 = vld [vmem:[#allocation5 + $0x88] sm:$0xff]  ;;  %s684_s8 = sshll.u32 %s773_s15, 4  ;;  %s685_s8 = int_to_ptr.vmem [resolvable:$false] %s684_s8 }
  0x60   : > { %v263_v25 = vld [vmem:[#allocation5 + $0x98] sm:$0xff]  ;;  %v524_v26 = vpack.c.bf16 %v258_v23, %v256_v22  ;;  %v260_v28 = vld [vmem:[#allocation5 + $0x80] sm:$0xff]  ;;  %v262_v29 = vld [vmem:[#allocation5 + $0x90] sm:$0xff]  ;;  %p682_p6 = pnand %p681_p4, %p889_p11  ;;  %s686_s21 = scalar_lea.vmem %s685_s8, 512 }
  0x61   : > { %v526_v27 = vpack.c.bf16 %v263_v25, %v261_v24  ;;  %v265_v30 = vld [vmem:[#allocation5 + $0xa8] sm:$0xff]  ;;  %v267_v31 = vld [vmem:[#allocation5 + $0xb8] sm:$0xff]  ;;  %v528_v32 = vpack.c.bf16 %v262_v29, %v260_v28  ;;  %v264_v34 = vld [vmem:[#allocation5 + $0xa0] sm:$0xff]  ;;  %p687_p12 = scmp.lt.s32.totalorder %s967_s11, %s685_s8  ;;  %p688_p10 = scmp.lt.s32.totalorder %s686_s21, %s680_s7 }
  0x62   : > { %517 = vmatpush1.bf16.msra.mxu0 %v516_v14  ;;  %v530_v33 = vpack.c.bf16 %v267_v31, %v265_v30  ;;  %v266_v35 = vld [vmem:[#allocation5 + $0xb0] sm:$0xff]  ;;  %v269_v36 = vld [vmem:[#allocation5 + $0xc8] sm:$0xff]  ;;  %v271_v37 = vld [vmem:[#allocation5 + $0xd8] sm:$0xff]  ;;  %p683_p8 = pneg %p682_p6 }
  0x63   : > { %519 = vmatprep.subr.bf16.mxu0 %v518_v15  ;;  %v532_v38 = vpack.c.bf16 %v266_v35, %v264_v34  ;;  %v534_v39 = vpack.c.bf16 %v271_v37, %v269_v36  ;;  %v268_v40 = vld [vmem:[#allocation5 + $0xc0] sm:$0xff]  ;;  %v270_v41 = vld [vmem:[#allocation5 + $0xd0] sm:$0xff]  ;;  %v273_v42 = vld [vmem:[#allocation5 + $0xe8] sm:$0xff]  ;;  %p689_p0 = por %p688_p10, %p687_p12 }
  0x64   : > { %v275_v43 = vld [vmem:[#allocation5 + $0xf8] sm:$0xff]  ;;  %v536_v44 = vpack.c.bf16 %v270_v41, %v268_v40  ;;  %v272_v46 = vld [vmem:[#allocation5 + $0xe0] sm:$0xff]  ;;  %v274_v47 = vld [vmem:[#allocation5 + $0xf0] sm:$0xff] }
  0x65   : > { %v538_v45 = vpack.c.bf16 %v275_v43, %v273_v42  ;;  %v540_v48 = vpack.c.bf16 %v274_v47, %v272_v46  ;;  %v276_v49 = vld [vmem:[%s946_s4] sm:$0xff]  ;;  %p690_p5 = pnand %p689_p0, %p683_p8 }
  0x66   : > { %521 = vmatpush1.bf16.msra.mxu0 %v520_v20  ;;  %v277_v53 = vld [vmem:[%s1015_s2] sm:$0x3] }
  0x67   : > { %523 = vmatprep.subr.bf16.mxu0 %v522_v21  ;;  %v282_v55 = vrot.slane %v277_v53, %v281_v52  ;;  %v286_v56 = vrot.slane %v277_v53, %v285_v54 }
  0x6a   : > { %525 = vmatpush1.bf16.msra.mxu0 %v524_v26 }
  0x6b   : > { %527 = vmatprep.subr.bf16.mxu0 %v526_v27 }
  0x6e   : > { %529 = vmatpush1.bf16.msra.mxu0 %v528_v32 }
  0x6f   : > { %531 = vmatprep.subr.bf16.mxu0 %v530_v33 }
  0x72   : > { %533 = vmatpush1.bf16.msra.mxu0 %v532_v38 }
  0x73   : > { %535 = vmatprep.subr.bf16.mxu0 %v534_v39 }
  0x76   : > { %537 = vmatpush1.bf16.msra.mxu0 %v536_v44 }
  0x77   : > { %539 = vmatprep.subr.bf16.mxu0 %v538_v45 }
  0x7a   : > { %541 = vmatpush1.bf16.msra.mxu0 %v540_v48 }
  0x7d   : > { %354 = vmatmul.mubr.f32.vlgmr.msra.gmra.mrb[0].mxu0 %v276_v49 }
 0x150   : > { %v355_v57 = vpop.f32.mrb[0].mxu0 }
 0x151   : > { %v356_v58 = vadd.f32 %v355_v57, %v282_v55  ;;  %v357_v59 = vpop.f32.mrb[1].mxu0 }
 0x152   : > { %v358_v60 = vadd.f32 %v357_v59, %v286_v56 }
 0x153   : > { %v360_v61 = vmul.f32 %v356_v58, %v356_v58 }
 0x154   : > { %v361_v62 = vmul.f32 %v358_v60, %v358_v60 }
 0x155   : > { %v362_v63 = vsub.f32 0.0, %v360_v61 }
 0x156   : > { %v363_v0 = vsub.f32 0.0, %v361_v62 }
 0x157   : > { %v364_v1 = vmul.f32 1.442695, %v362_v63 }
 0x158   : > { %v366_v2 = vmul.f32 1.442695, %v363_v0 }
 0x159   : > { %618 = vpow2.f32 %v364_v1 }
 0x15a   : > { %620 = vpow2.f32 %v366_v2 }
 0x163   : > { %v619_v3 = vpop.eup %618 }
 0x164   : > { %v621_v4 = vpop.eup %620  ;;  %368 = vst [vmem:[%s236_s10] sm:$0xff] %v619_v3 }
 0x165   : > { %369 = vst [vmem:[%s236_s10 + $0x8] sm:$0xff] %v621_v4 }
 0x166   : > { %693 = shalt.err (!%p690_p5)
}
 0x167   : > { %s694_s19 = scalar_lea.hbm %s965_s6, 256  ;;  %s698_s4 = scalar_lea.hbm %s1016_s3, 1024 }
 0x168   : > { %p695_p9 = scmp.ne.s32.totalorder %s965_s6, %s694_s19  ;;  %p699_p7 = scmp.lt.u32.totalorder %s965_s6, %s1016_s3 }
 0x169   : > { %p700_p3 = scmp.lt.u32.totalorder %s698_s4, %s694_s19  ;;  %p702_p4 = scmp.lt.u32.totalorder %s694_s19, %s965_s6 }
 0x16a   : > { %p696_p1 = pnand %p695_p9, %p889_p11 }
 0x16b   : > { %p701_p13 = por %p700_p3, %p699_p7 }
 0x16c   : > { %p697_p2 = pneg %p696_p1 }
 0x16d   : > { %p703_p6 = por %p702_p4, %p701_p13 }
 0x16f   : > { %p704_p8 = pnand %p703_p6, %p697_p2 }
 0x171   : > { %707 = shalt.err (!%p704_p8)
}
 0x172   : > { %548 = dma.vmem_to_hbm [thread:$0]  (%p889_p11), %s967_s11, 256, %s965_s6, %s371_s26  }
 0x173 PF: > { %p565_p12 = scmp.ge.s32.totalorder %s766_s17, 2  ;;  %s399_s24 = sand.u32 1, %s746_s12  }
 0x174   : > { %p1034_p10 = scmp.ne.s32.totalorder %s1024_s23, 0  ;;  %s400_s9 = scalar_lea.sflag [#allocation4], %s399_s24 }
 0x176   : > { %p559_p0 = pnand %p565_p12, %p1034_p10 }
 0x178   : > { %741 = dma.done.wait (!%p559_p0), %s400_s9, 256  }
 0x179   : > { %743 = vsyncadd (!%p559_p0), %s400_s9, 4294967040  ;;  %s20_s17 = sadd.s32 1, %s766_s17   ;;  %s1035_s12 = smov %s750_s13 }
 0x17a   : > { %p17_p5 = scmp.ge.s32.totalorder %s20_s17, 6   ;;  %s1036_s13 = smov %s754_s14 }
 0x17b   : > { %s1037_s14 = smov %s898_s5  ;;  %s1038_s15 = smov %s762_s16 }
 0x17c   : > { %s1039_s16 = smov %s1041_s28  ;;  %19 = sbr.rel (!%p17_p5) target bundleno = 7 (0x7), region = 85 }
 0x183   :  { %405 = vsyncpa [#allocation3], 1 }
 0x184   :  { %407 = vsyncpa [#allocation3 + $0x1], 1 }
 0x185   :  { %408 = vsyncpa [#allocation6], 1 }
 0x186   :  { %409 = vsyncpa [#allocation4], 1 }
 0x187   :  { %411 = vsyncpa [#allocation4 + $0x1], 1 }

</bundles_post_ra>
